<compile_context>
chip_gen: v7x
topology: tpu7x:2x2x1
jax: 0.10.0
libtpu: 0.0.40
codegen_flags: <defaults>
</compile_context>

<pallas_src>
import math
import functools

import jax
import jax.numpy as jnp
from jax import lax
from jax.experimental import pallas as pl
from jax.experimental.pallas import tpu as pltpu


def _vmem_capacity_bytes():
    try:
        info = pltpu.get_tpu_info()
        cap = getattr(info, "vmem_capacity_bytes", None)
        if cap:
            return int(cap)
    except Exception:
        pass
    return 128 * 1024 * 1024


def _is_v5_device():
    try:
        return "v5" in jax.devices()[0].device_kind.lower()
    except Exception:
        return False


def _pick_tile(n, candidates):
    """Largest candidate tile that evenly divides n; fall back to the full extent."""
    # TODO(synk): ragged S falls back to a full-S tile (correct but untiled); pad+mask
    # handling would be needed for very long, non-divisible sequences.
    for t in candidates:
        if n >= t and n % t == 0:
            return t
    return n


# ---------------------------------------------------------------------------
# Kernel 1: fused projections (q|k|v|focus-query) + focus gating, row-tiled.
# Emits q/k/v in (B, H, S, dh) layout and P/zcoef packed as (B, H, S, 2).
# ---------------------------------------------------------------------------
def qkv_focus_kernel(x_ref, gfoc_ref, w_ref, b_ref, u_ref,
                     q_out, k_out, v_out, pz_out, *, key_len, scale):
    f32 = jnp.float32
    bf16 = jnp.bfloat16
    num_heads = q_out.shape[1]
    head_dim = q_out.shape[3]
    d_model = num_heads * head_dim

    x = x_ref[0]                                                           # (tr, D) bf16
    # One wide MXU matmul: columns = [q | k | v | c_pre], f32 accumulation.
    xw = jnp.dot(x, w_ref[...], preferred_element_type=f32) + b_ref[...]   # (tr, 4D) f32

    q = xw[:, 0 * d_model:1 * d_model] * scale      # 1/sqrt(dh) folded here
    k = xw[:, 1 * d_model:2 * d_model]
    v = xw[:, 2 * d_model:3 * d_model]
    # c = tanh(x @ (Wq@Wfq) + (bq@Wfq + bfq) + gfoc), gfoc precomputed per batch.
    c = jnp.tanh(xw[:, 3 * d_model:4 * d_model] + gfoc_ref[0])

    # p/z for all heads in one MXU matmul against the block-diagonal (D, 2H) up|uz.
    pz = jnp.dot(c.astype(bf16), u_ref[...], preferred_element_type=f32)   # (tr, 2H)
    big_p = jax.nn.sigmoid(pz[:, :num_heads]) * key_len
    big_z = jax.nn.sigmoid(pz[:, num_heads:]) * key_len
    zcoef = -2.0 / (big_z * big_z)   # exact (feeds an exponent); G = zcoef*(j-P)^2

    q16, k16, v16 = q.astype(bf16), k.astype(bf16), v.astype(bf16)
    for h in range(num_heads):       # head-major layout for the attention kernel
        lo = h * head_dim
        q_out[0, h] = q16[:, lo:lo + head_dim]
        k_out[0, h] = k16[:, lo:lo + head_dim]
        v_out[0, h] = v16[:, lo:lo + head_dim]
        pz_out[0, h] = jnp.concatenate(
            [big_p[:, h:h + 1], zcoef[:, h:h + 1]], axis=-1)               # (tr, 2)


# ---------------------------------------------------------------------------
# Kernel 2: flash-style attention with focus bias + fused o_proj epilogue.
# ---------------------------------------------------------------------------
def flash_attn_kernel(q_ref, k_ref, v_ref, pz_ref, wo_ref, bo_ref,
                      o_ref, m_sc, l_sc, acc_sc, *, exp_bf16):
    f32 = jnp.float32
    bf16 = jnp.bfloat16
    ki = pl.program_id(2)

    @pl.when(ki == 0)
    def _init():
        m_sc[...] = jnp.full(m_sc.shape, -jnp.inf, f32)
        l_sc[...] = jnp.zeros(l_sc.shape, f32)
        acc_sc[...] = jnp.zeros(acc_sc.shape, f32)

    q = q_ref[0]                          # (H, tq, dh) bf16, pre-scaled by 1/sqrt(dh)
    k = k_ref[0]                          # (H, tk, dh) bf16
    v = v_ref[0]                          # (H, tk, dh) bf16
    num_heads, tq, _ = q.shape
    tk = k.shape[1]

    # Scores for all heads at once (batched MXU matmul), f32 accumulation.
    s = jnp.einsum('hqd,hkd->hqk', q, k, preferred_element_type=f32)       # (H, tq, tk)

    # Focus-attention bias: G = zcoef * (j - P)^2, zcoef already holds -2/Z^2.
    pz = pz_ref[0]                        # (H, tq, 2) f32: [..., 0]=P, [..., 1]=zcoef
    big_p = pz[:, :, 0:1]
    zcoef = pz[:, :, 1:2]
    j = lax.broadcasted_iota(f32, (1, 1, tk), 2) + (ki * tk).astype(f32)   # broadcast
    s = s + zcoef * (j - big_p) ** 2

    # Online softmax (running max / running sum).
    m_prev = m_sc[...]
    m_new = jnp.maximum(m_prev, s.max(axis=-1, keepdims=True))
    alpha = jnp.exp(m_prev - m_new)
    if exp_bf16:                          # v6e/v7x: bf16 EUP ~2x exp throughput
        p_exp = jnp.exp((s - m_new).astype(bf16))
        p_sum = jnp.sum(p_exp, axis=-1, keepdims=True, dtype=f32)
    else:                                 # v5e: no bf16 EUP, keep f32 exp
        p32 = jnp.exp(s - m_new)
        p_sum = p32.sum(axis=-1, keepdims=True)
        p_exp = p32.astype(bf16)
    l_sc[...] = alpha * l_sc[...] + p_sum
    acc_sc[...] = alpha * acc_sc[...] + jnp.einsum(
        'hqk,hkd->hqd', p_exp, v, preferred_element_type=f32)
    m_sc[...] = m_new
    # TODO(synk): dropout on attention_probs is identity in eval mode; not emitted.

    @pl.when(ki == pl.num_programs(2) - 1)
    def _finalize():
        ctx = acc_sc[...] * pl.reciprocal(l_sc[...], approx=True)          # (H, tq, dh)
        ctx16 = ctx.astype(bf16)
        # One (tq, D) x (D, D) MXU matmul instead of a per-head loop.
        ctx2d = jnp.concatenate([ctx16[h] for h in range(num_heads)], axis=-1)
        out = jnp.dot(ctx2d, wo_ref[...], preferred_element_type=f32) + bo_ref[...]
        o_ref[0] = out.astype(o_ref.dtype)


# ---------------------------------------------------------------------------
# Wrapper
# ---------------------------------------------------------------------------
def multi_headed_attention(hidden_states, params, num_heads, head_dim):
    """Forward pass of MultiHeadedAttention(with_focus_attn=True), eval mode."""
    wq, bq, wk, bk, wv, bv, wfq, bfq, wfg, bfg, up, uz, wo, bo = params
    B, S, D = hidden_states.shape
    H, dh = num_heads, head_dim
    assert H * dh == D
    f32, bf16 = jnp.float32, jnp.bfloat16

    x16 = hidden_states.astype(bf16)

    # Compose linear_focus_query through the query projection in f32, cast once:
    #   c_pre = x @ (Wq @ Wfq) + (bq @ Wfq + bfq)
    wfq_eff = wq @ wfq
    bfq_eff = bq @ wfq + bfq
    w_big = jnp.concatenate([wq, wk, wv, wfq_eff], axis=1).astype(bf16)    # (D, 4D)
    b_big = jnp.concatenate([bq, bk, bv, bfq_eff], axis=1).astype(f32)     # (1, 4D)

    # Global focus term: ((mean_S x)@Wq + bq)@Wfg + bfg -> tiny (B,1,D) XLA matmuls.
    glo = jnp.mean(hidden_states, axis=1, keepdims=True) @ wq + bq
    gfoc = (glo @ wfg + bfg).astype(f32)                                   # (B, 1, D)

    # Fuse up/uz into one block-diagonal (D, 2H) matrix: p/z in a single MXU matmul.
    eye = jnp.eye(H, dtype=f32)
    bdiag = lambda u: (u[:, :, None] * eye[:, None, :]).reshape(D, H)
    u2 = jnp.concatenate([bdiag(up), bdiag(uz)], axis=1).astype(bf16)      # (D, 2H)

    wo16 = wo.astype(bf16)

    # Per-generation budgets: <= ~56 MiB on v7x (64 MiB VMEM), ~112 MiB + wider tiles
    # on 128 MiB parts (v5e/v6e).
    vmem_cap = _vmem_capacity_bytes()
    vmem_limit = int(min((vmem_cap * 7) // 8, 112 * 1024 * 1024))
    big_vmem = vmem_cap >= 100 * 1024 * 1024
    tr = _pick_tile(S, (1024, 512, 256, 128) if big_vmem else (512, 256, 128))
    tq = _pick_tile(S, (512, 256, 128) if big_vmem else (256, 128))
    tk = _pick_tile(S, (1024, 512, 256, 128) if big_vmem else (512, 256, 128))
    exp_bf16 = not _is_v5_device()   # bf16 EUP exp only on v6e/v7x-class parts

    # TODO(synk): constant-index weight blocks (w_big/u2/wo) are still double-buffered
    # by the default pipeline; pl.Buffered(1)/manual residency would free ~5*D*D bf16
    # bytes of VMEM on v7x once verified on the target jax version.
    const2 = lambda b, i: (0, 0)

    # ---- kernel 1: fused projections + focus gates, head-major outputs ----
    q4, k4, v4, pz4 = pl.pallas_call(
        functools.partial(qkv_focus_kernel, key_len=float(S), scale=1.0 / math.sqrt(dh)),
        grid=(B, S // tr),
        in_specs=[
            pl.BlockSpec((1, tr, D), lambda b, i: (b, i, 0)),    # x tile
            pl.BlockSpec((1, 1, D), lambda b, i: (b, 0, 0)),     # gfoc (per batch)
            pl.BlockSpec((D, 4 * D), const2),                    # fused Wq|Wk|Wv|Wfq'
            pl.BlockSpec((1, 4 * D), const2),                    # fused bias
            pl.BlockSpec((D, 2 * H), const2),                    # block-diag up|uz
        ],
        out_specs=(
            pl.BlockSpec((1, H, tr, dh), lambda b, i: (b, 0, i, 0)),
            pl.BlockSpec((1, H, tr, dh), lambda b, i: (b, 0, i, 0)),
            pl.BlockSpec((1, H, tr, dh), lambda b, i: (b, 0, i, 0)),
            pl.BlockSpec((1, H, tr, 2), lambda b, i: (b, 0, i, 0)),
        ),
        out_shape=(
            jax.ShapeDtypeStruct((B, H, S, dh), bf16),
            jax.ShapeDtypeStruct((B, H, S, dh), bf16),
            jax.ShapeDtypeStruct((B, H, S, dh), bf16),
            jax.ShapeDtypeStruct((B, H, S, 2), f32),
        ),
        compiler_params=pltpu.CompilerParams(
            dimension_semantics=("parallel", "parallel"),
            vmem_limit_bytes=vmem_limit),
    )(x16, gfoc, w_big, b_big, u2)

    # ---- kernel 2: flash attention + focus bias + fused o_proj ------------
    # TODO(synk): on v5e a K/V-resident variant (drop the ki grid axis, full-S K/V
    # blocks per batch, in-kernel fori_loop over KV chunks) cuts K/V HBM re-streaming
    # by S/tq x when 2*H*S*dh*2B fits VMEM; if K/V DMA is exposed at small tk, bump
    # those BlockSpecs to pl.Buffered(3).
    out = pl.pallas_call(
        functools.partial(flash_attn_kernel, exp_bf16=exp_bf16),
        grid=(B, S // tq, S // tk),
        in_specs=[
            pl.BlockSpec((1, H, tq, dh), lambda b, qi, ki: (b, 0, qi, 0)),   # q (scaled)
            pl.BlockSpec((1, H, tk, dh), lambda b, qi, ki: (b, 0, ki, 0)),   # k
            pl.BlockSpec((1, H, tk, dh), lambda b, qi, ki: (b, 0, ki, 0)),   # v
            pl.BlockSpec((1, H, tq, 2), lambda b, qi, ki: (b, 0, qi, 0)),    # P|zcoef
            pl.BlockSpec((D, D), lambda b, qi, ki: (0, 0)),                  # o_proj W
            pl.BlockSpec((1, D), lambda b, qi, ki: (0, 0)),                  # o_proj b
        ],
        out_specs=pl.BlockSpec((1, tq, D), lambda b, qi, ki: (b, qi, 0)),
        out_shape=jax.ShapeDtypeStruct((B, S, D), hidden_states.dtype),
        scratch_shapes=[
            pltpu.VMEM((H, tq, 1), jnp.float32),    # running max
            pltpu.VMEM((H, tq, 1), jnp.float32),    # running sum
            pltpu.VMEM((H, tq, dh), jnp.float32),   # output accumulator
        ],
        compiler_params=pltpu.CompilerParams(
            dimension_semantics=("parallel", "parallel", "arbitrary"),
            vmem_limit_bytes=vmem_limit),
    )(q4, k4, v4, pz4, wo16, bo)
    return out


# ---------------------------------------------------------------------------
# Pure-JAX reference (f32) mirroring the PyTorch forward in eval mode.
# ---------------------------------------------------------------------------
def reference(hidden_states, params, num_heads, head_dim):
    wq, bq, wk, bk, wv, bv, wfq, bfq, wfg, bfg, up, uz, wo, bo = params
    B, S, D = hidden_states.shape
    q = hidden_states @ wq + bq
    k = hidden_states @ wk + bk
    v = hidden_states @ wv + bv
    glo = jnp.mean(q, axis=1, keepdims=True)
    c = jnp.tanh(q @ wfq + bfq + glo @ wfg + bfg)

    def split(t):
        return t.reshape(B, S, num_heads, head_dim).transpose(0, 2, 1, 3)

    ch = split(c)
    p = jnp.sum(ch * up[None, :, None, :], axis=-1)
    z = jnp.sum(ch * uz[None, :, None, :], axis=-1)
    P = jax.nn.sigmoid(p) * S
    Z = jax.nn.sigmoid(z) * S
    j = jnp.arange(S, dtype=P.dtype)[None, None, None, :]
    G = -(j - P[..., None]) ** 2 * 2.0 / (Z[..., None] ** 2)

    qh, kh, vh = split(q), split(k), split(v)
    scores = jnp.einsum('bhqd,bhkd->bhqk', qh, kh) / math.sqrt(head_dim) + G
    probs = jax.nn.softmax(scores, axis=-1)
    ctx = jnp.einsum('bhqk,bhkd->bhqd', probs, vh)
    ctx = ctx.transpose(0, 2, 1, 3).reshape(B, S, D)
    return ctx @ wo + bo


if __name__ == "__main__":
    B, S = 2, 8
    num_attn_heads = 4
    attn_hidden_size = 32
    head_dim = attn_hidden_size // num_attn_heads
    D = attn_hidden_size

    key = jax.random.PRNGKey(0)
    keys = jax.random.split(key, 16)

    def linear_params(kw, kb, scale=0.05):
        # weight stored pre-transposed as (in, out); bias as (1, out)
        w = jax.random.normal(kw, (D, D), jnp.float32) * scale
        b = jax.random.normal(kb, (1, D), jnp.float32) * scale
        return w, b

    wq, bq = linear_params(keys[0], keys[1])
    wk, bk = linear_params(keys[2], keys[3])
    wv, bv = linear_params(keys[4], keys[5])
    wfq, bfq = linear_params(keys[6], keys[7])
    wfg, bfg = linear_params(keys[8], keys[9])
    wo, bo = linear_params(keys[10], keys[11])
    # up / uz: torch shape (H, 1, dh) -> stored flattened as (H, dh)
    up = jax.random.normal(keys[12], (num_attn_heads, head_dim), jnp.float32) * 0.3
    uz = jax.random.normal(keys[13], (num_attn_heads, head_dim), jnp.float32) * 0.3

    params = (wq, bq, wk, bk, wv, bv, wfq, bfq, wfg, bfg, up, uz, wo, bo)

    hidden_states = jax.random.normal(keys[14], (B, S, D), jnp.float32)

    out = multi_headed_attention(hidden_states, params, num_attn_heads, head_dim)
    out = jax.block_until_ready(out)

    ref = jax.block_until_ready(reference(hidden_states, params, num_attn_heads, head_dim))
    assert out.shape == (B, S, D)
    # bf16 MXU operands + approx softmax reciprocal -> looser tolerance than pure f32.
    assert jnp.allclose(out, ref, atol=2e-2, rtol=2e-2), "mismatch vs reference"

    print("KERNEL_OK")
</pallas_src>

<mosaic_0001>
module attributes {stable_mosaic.version = 11 : i64} {
  func.func @qkv_focus_kernel(%arg0: i32, %arg1: i32, %arg2: memref<1x8x32xbf16, #tpu.memory_space<vmem>>, %arg3: memref<1x1x32xf32, #tpu.memory_space<vmem>>, %arg4: memref<32x128xbf16, #tpu.memory_space<vmem>>, %arg5: memref<1x128xf32, #tpu.memory_space<vmem>>, %arg6: memref<32x8xbf16, #tpu.memory_space<vmem>>, %arg7: memref<1x4x8x8xbf16, #tpu.memory_space<vmem>>, %arg8: memref<1x4x8x8xbf16, #tpu.memory_space<vmem>>, %arg9: memref<1x4x8x8xbf16, #tpu.memory_space<vmem>>, %arg10: memref<1x4x8x2xf32, #tpu.memory_space<vmem>>) attributes {dimension_semantics = [#tpu.dimension_semantics<parallel>, #tpu.dimension_semantics<parallel>], iteration_bounds = array<i64: 2, 1>, scalar_prefetch = 0 : i64, scratch_operands = 0 : i64, tpu.core_type = #tpu.core_type<tc>, window_params = [{transform_indices = @transform_0, window_bounds = array<i64: 1, 8, 32>}, {transform_indices = @transform_1, window_bounds = array<i64: 1, 1, 32>}, {pipeline_mode = #tpu.pipeline_mode<synchronous>, transform_indices = @transform_2, window_bounds = array<i64: 32, 128>}, {pipeline_mode = #tpu.pipeline_mode<synchronous>, transform_indices = @transform_3, window_bounds = array<i64: 1, 128>}, {pipeline_mode = #tpu.pipeline_mode<synchronous>, transform_indices = @transform_4, window_bounds = array<i64: 32, 8>}, {transform_indices = @transform_5, window_bounds = array<i64: 1, 4, 8, 8>}, {transform_indices = @transform_6, window_bounds = array<i64: 1, 4, 8, 8>}, {transform_indices = @transform_7, window_bounds = array<i64: 1, 4, 8, 8>}, {transform_indices = @transform_8, window_bounds = array<i64: 1, 4, 8, 2>}]} {
    %c0 = arith.constant 0 : index
    %c0_0 = arith.constant 0 : index
    %c0_1 = arith.constant 0 : index
    %0 = vector.load %arg2[%c0, %c0_0, %c0_1] : memref<1x8x32xbf16, #tpu.memory_space<vmem>>, vector<1x8x32xbf16>
    %1 = vector.shape_cast %0 : vector<1x8x32xbf16> to vector<8x32xbf16>
    %c0_2 = arith.constant 0 : index
    %c0_3 = arith.constant 0 : index
    %2 = vector.load %arg4[%c0_2, %c0_3] : memref<32x128xbf16, #tpu.memory_space<vmem>>, vector<32x128xbf16>
    %cst = arith.constant dense<0.000000e+00> : vector<8x128xf32>
    %3 = tpu.matmul %1, %2, %cst {dimension_numbers = #tpu.dot_dimension_numbers<[1], [0], [0], [1], [0, 0, 1, 1], [], []>} : vector<8x32xbf16>, vector<32x128xbf16>, vector<8x128xf32> -> vector<8x128xf32>
    %c0_4 = arith.constant 0 : index
    %c0_5 = arith.constant 0 : index
    %4 = vector.load %arg5[%c0_4, %c0_5] : memref<1x128xf32, #tpu.memory_space<vmem>>, vector<1x128xf32>
    %5 = vector.broadcast %4 : vector<1x128xf32> to vector<8x128xf32>
    %6 = arith.addf %3, %5 : vector<8x128xf32>
    %7 = vector.extract_strided_slice %6 {offsets = [0, 0], sizes = [8, 32], strides = [1, 1]} : vector<8x128xf32> to vector<8x32xf32>
    %cst_6 = arith.constant 0.353553385 : f32
    %8 = vector.broadcast %cst_6 : f32 to vector<8x32xf32>
    %9 = arith.mulf %7, %8 : vector<8x32xf32>
    %10 = vector.extract_strided_slice %6 {offsets = [0, 32], sizes = [8, 32], strides = [1, 1]} : vector<8x128xf32> to vector<8x32xf32>
    %11 = vector.extract_strided_slice %6 {offsets = [0, 64], sizes = [8, 32], strides = [1, 1]} : vector<8x128xf32> to vector<8x32xf32>
    %12 = vector.extract_strided_slice %6 {offsets = [0, 96], sizes = [8, 32], strides = [1, 1]} : vector<8x128xf32> to vector<8x32xf32>
    %c0_7 = arith.constant 0 : index
    %c0_8 = arith.constant 0 : index
    %c0_9 = arith.constant 0 : index
    %13 = vector.load %arg3[%c0_7, %c0_8, %c0_9] : memref<1x1x32xf32, #tpu.memory_space<vmem>>, vector<1x1x32xf32>
    %14 = vector.shape_cast %13 : vector<1x1x32xf32> to vector<1x32xf32>
    %15 = vector.broadcast %14 : vector<1x32xf32> to vector<8x32xf32>
    %16 = arith.addf %12, %15 : vector<8x32xf32>
    %17 = math.tanh %16 : vector<8x32xf32>
    %18 = arith.truncf %17 : vector<8x32xf32> to vector<8x32xbf16>
    %c0_10 = arith.constant 0 : index
    %c0_11 = arith.constant 0 : index
    %19 = vector.load %arg6[%c0_10, %c0_11] : memref<32x8xbf16, #tpu.memory_space<vmem>>, vector<32x8xbf16>
    %cst_12 = arith.constant dense<0.000000e+00> : vector<8x8xf32>
    %20 = tpu.matmul %18, %19, %cst_12 {dimension_numbers = #tpu.dot_dimension_numbers<[1], [0], [0], [1], [0, 0, 1, 1], [], []>} : vector<8x32xbf16>, vector<32x8xbf16>, vector<8x8xf32> -> vector<8x8xf32>
    %21 = vector.extract_strided_slice %20 {offsets = [0, 0], sizes = [8, 4], strides = [1, 1]} : vector<8x8xf32> to vector<8x4xf32>
    %22 = arith.negf %21 : vector<8x4xf32>
    %23 = math.exp %22 : vector<8x4xf32>
    %cst_13 = arith.constant 1.000000e+00 : f32
    %24 = vector.broadcast %cst_13 : f32 to vector<8x4xf32>
    %25 = arith.addf %24, %23 : vector<8x4xf32>
    %26 = arith.divf %24, %25 : vector<8x4xf32>
    %cst_14 = arith.constant 8.000000e+00 : f32
    %27 = vector.broadcast %cst_14 : f32 to vector<8x4xf32>
    %28 = arith.mulf %26, %27 : vector<8x4xf32>
    %29 = vector.extract_strided_slice %20 {offsets = [0, 4], sizes = [8, 4], strides = [1, 1]} : vector<8x8xf32> to vector<8x4xf32>
    %30 = arith.negf %29 : vector<8x4xf32>
    %31 = math.exp %30 : vector<8x4xf32>
    %cst_15 = arith.constant 1.000000e+00 : f32
    %32 = vector.broadcast %cst_15 : f32 to vector<8x4xf32>
    %33 = arith.addf %32, %31 : vector<8x4xf32>
    %34 = arith.divf %32, %33 : vector<8x4xf32>
    %cst_16 = arith.constant 8.000000e+00 : f32
    %35 = vector.broadcast %cst_16 : f32 to vector<8x4xf32>
    %36 = arith.mulf %34, %35 : vector<8x4xf32>
    %37 = arith.mulf %36, %36 : vector<8x4xf32>
    %cst_17 = arith.constant -2.000000e+00 : f32
    %38 = vector.broadcast %cst_17 : f32 to vector<8x4xf32>
    %39 = arith.divf %38, %37 : vector<8x4xf32>
    %40 = arith.truncf %9 : vector<8x32xf32> to vector<8x32xbf16>
    %41 = arith.truncf %10 : vector<8x32xf32> to vector<8x32xbf16>
    %42 = arith.truncf %11 : vector<8x32xf32> to vector<8x32xbf16>
    %43 = vector.extract_strided_slice %40 {offsets = [0, 0], sizes = [8, 8], strides = [1, 1]} : vector<8x32xbf16> to vector<8x8xbf16>
    %c0_18 = arith.constant 0 : index
    %c0_19 = arith.constant 0 : index
    %c0_20 = arith.constant 0 : index
    %c0_21 = arith.constant 0 : index
    %44 = vector.load %arg7[%c0_18, %c0_19, %c0_20, %c0_21] : memref<1x4x8x8xbf16, #tpu.memory_space<vmem>>, vector<1x1x8x8xbf16>
    %45 = vector.shape_cast %44 : vector<1x1x8x8xbf16> to vector<8x8xbf16>
    %46 = vector.shape_cast %43 : vector<8x8xbf16> to vector<1x1x8x8xbf16>
    tpu.vector_store %arg7[%c0_18, %c0_19, %c0_20, %c0_21], %46 {strides = array<i32>} : memref<1x4x8x8xbf16, #tpu.memory_space<vmem>>, vector<1x1x8x8xbf16>,
    %47 = vector.extract_strided_slice %41 {offsets = [0, 0], sizes = [8, 8], strides = [1, 1]} : vector<8x32xbf16> to vector<8x8xbf16>
    %c0_22 = arith.constant 0 : index
    %c0_23 = arith.constant 0 : index
    %c0_24 = arith.constant 0 : index
    %c0_25 = arith.constant 0 : index
    %48 = vector.load %arg8[%c0_22, %c0_23, %c0_24, %c0_25] : memref<1x4x8x8xbf16, #tpu.memory_space<vmem>>, vector<1x1x8x8xbf16>
    %49 = vector.shape_cast %48 : vector<1x1x8x8xbf16> to vector<8x8xbf16>
    %50 = vector.shape_cast %47 : vector<8x8xbf16> to vector<1x1x8x8xbf16>
    tpu.vector_store %arg8[%c0_22, %c0_23, %c0_24, %c0_25], %50 {strides = array<i32>} : memref<1x4x8x8xbf16, #tpu.memory_space<vmem>>, vector<1x1x8x8xbf16>,
    %51 = vector.extract_strided_slice %42 {offsets = [0, 0], sizes = [8, 8], strides = [1, 1]} : vector<8x32xbf16> to vector<8x8xbf16>
    %c0_26 = arith.constant 0 : index
    %c0_27 = arith.constant 0 : index
    %c0_28 = arith.constant 0 : index
    %c0_29 = arith.constant 0 : index
    %52 = vector.load %arg9[%c0_26, %c0_27, %c0_28, %c0_29] : memref<1x4x8x8xbf16, #tpu.memory_space<vmem>>, vector<1x1x8x8xbf16>
    %53 = vector.shape_cast %52 : vector<1x1x8x8xbf16> to vector<8x8xbf16>
    %54 = vector.shape_cast %51 : vector<8x8xbf16> to vector<1x1x8x8xbf16>
    tpu.vector_store %arg9[%c0_26, %c0_27, %c0_28, %c0_29], %54 {strides = array<i32>} : memref<1x4x8x8xbf16, #tpu.memory_space<vmem>>, vector<1x1x8x8xbf16>,
    %55 = vector.extract_strided_slice %28 {offsets = [0, 0], sizes = [8, 1], strides = [1, 1]} : vector<8x4xf32> to vector<8x1xf32>
    %56 = vector.extract_strided_slice %39 {offsets = [0, 0], sizes = [8, 1], strides = [1, 1]} : vector<8x4xf32> to vector<8x1xf32>
    %57 = tpu.concatenate %55, %56 in 1 : vector<8x1xf32>, vector<8x1xf32> -> vector<8x2xf32>
    %c0_30 = arith.constant 0 : index
    %c0_31 = arith.constant 0 : index
    %c0_32 = arith.constant 0 : index
    %c0_33 = arith.constant 0 : index
    %58 = vector.load %arg10[%c0_30, %c0_31, %c0_32, %c0_33] : memref<1x4x8x2xf32, #tpu.memory_space<vmem>>, vector<1x1x8x2xf32>
    %59 = vector.shape_cast %58 : vector<1x1x8x2xf32> to vector<8x2xf32>
    %60 = vector.shape_cast %57 : vector<8x2xf32> to vector<1x1x8x2xf32>
    tpu.vector_store %arg10[%c0_30, %c0_31, %c0_32, %c0_33], %60 {strides = array<i32>} : memref<1x4x8x2xf32, #tpu.memory_space<vmem>>, vector<1x1x8x2xf32>,
    %61 = vector.extract_strided_slice %40 {offsets = [0, 8], sizes = [8, 8], strides = [1, 1]} : vector<8x32xbf16> to vector<8x8xbf16>
    %c0_34 = arith.constant 0 : index
    %c1 = arith.constant 1 : index
    %c0_35 = arith.constant 0 : index
    %c0_36 = arith.constant 0 : index
    %62 = vector.load %arg7[%c0_34, %c1, %c0_35, %c0_36] : memref<1x4x8x8xbf16, #tpu.memory_space<vmem>>, vector<1x1x8x8xbf16>
    %63 = vector.shape_cast %62 : vector<1x1x8x8xbf16> to vector<8x8xbf16>
    %64 = vector.shape_cast %61 : vector<8x8xbf16> to vector<1x1x8x8xbf16>
    tpu.vector_store %arg7[%c0_34, %c1, %c0_35, %c0_36], %64 {strides = array<i32>} : memref<1x4x8x8xbf16, #tpu.memory_space<vmem>>, vector<1x1x8x8xbf16>,
    %65 = vector.extract_strided_slice %41 {offsets = [0, 8], sizes = [8, 8], strides = [1, 1]} : vector<8x32xbf16> to vector<8x8xbf16>
    %c0_37 = arith.constant 0 : index
    %c1_38 = arith.constant 1 : index
    %c0_39 = arith.constant 0 : index
    %c0_40 = arith.constant 0 : index
    %66 = vector.load %arg8[%c0_37, %c1_38, %c0_39, %c0_40] : memref<1x4x8x8xbf16, #tpu.memory_space<vmem>>, vector<1x1x8x8xbf16>
    %67 = vector.shape_cast %66 : vector<1x1x8x8xbf16> to vector<8x8xbf16>
    %68 = vector.shape_cast %65 : vector<8x8xbf16> to vector<1x1x8x8xbf16>
    tpu.vector_store %arg8[%c0_37, %c1_38, %c0_39, %c0_40], %68 {strides = array<i32>} : memref<1x4x8x8xbf16, #tpu.memory_space<vmem>>, vector<1x1x8x8xbf16>,
    %69 = vector.extract_strided_slice %42 {offsets = [0, 8], sizes = [8, 8], strides = [1, 1]} : vector<8x32xbf16> to vector<8x8xbf16>
    %c0_41 = arith.constant 0 : index
    %c1_42 = arith.constant 1 : index
    %c0_43 = arith.constant 0 : index
    %c0_44 = arith.constant 0 : index
    %70 = vector.load %arg9[%c0_41, %c1_42, %c0_43, %c0_44] : memref<1x4x8x8xbf16, #tpu.memory_space<vmem>>, vector<1x1x8x8xbf16>
    %71 = vector.shape_cast %70 : vector<1x1x8x8xbf16> to vector<8x8xbf16>
    %72 = vector.shape_cast %69 : vector<8x8xbf16> to vector<1x1x8x8xbf16>
    tpu.vector_store %arg9[%c0_41, %c1_42, %c0_43, %c0_44], %72 {strides = array<i32>} : memref<1x4x8x8xbf16, #tpu.memory_space<vmem>>, vector<1x1x8x8xbf16>,
    %73 = vector.extract_strided_slice %28 {offsets = [0, 1], sizes = [8, 1], strides = [1, 1]} : vector<8x4xf32> to vector<8x1xf32>
    %74 = vector.extract_strided_slice %39 {offsets = [0, 1], sizes = [8, 1], strides = [1, 1]} : vector<8x4xf32> to vector<8x1xf32>
    %75 = tpu.concatenate %73, %74 in 1 : vector<8x1xf32>, vector<8x1xf32> -> vector<8x2xf32>
    %c0_45 = arith.constant 0 : index
    %c1_46 = arith.constant 1 : index
    %c0_47 = arith.constant 0 : index
    %c0_48 = arith.constant 0 : index
    %76 = vector.load %arg10[%c0_45, %c1_46, %c0_47, %c0_48] : memref<1x4x8x2xf32, #tpu.memory_space<vmem>>, vector<1x1x8x2xf32>
    %77 = vector.shape_cast %76 : vector<1x1x8x2xf32> to vector<8x2xf32>
    %78 = vector.shape_cast %75 : vector<8x2xf32> to vector<1x1x8x2xf32>
    tpu.vector_store %arg10[%c0_45, %c1_46, %c0_47, %c0_48], %78 {strides = array<i32>} : memref<1x4x8x2xf32, #tpu.memory_space<vmem>>, vector<1x1x8x2xf32>,
    %79 = vector.extract_strided_slice %40 {offsets = [0, 16], sizes = [8, 8], strides = [1, 1]} : vector<8x32xbf16> to vector<8x8xbf16>
    %c0_49 = arith.constant 0 : index
    %c2 = arith.constant 2 : index
    %c0_50 = arith.constant 0 : index
    %c0_51 = arith.constant 0 : index
    %80 = vector.load %arg7[%c0_49, %c2, %c0_50, %c0_51] : memref<1x4x8x8xbf16, #tpu.memory_space<vmem>>, vector<1x1x8x8xbf16>
    %81 = vector.shape_cast %80 : vector<1x1x8x8xbf16> to vector<8x8xbf16>
    %82 = vector.shape_cast %79 : vector<8x8xbf16> to vector<1x1x8x8xbf16>
    tpu.vector_store %arg7[%c0_49, %c2, %c0_50, %c0_51], %82 {strides = array<i32>} : memref<1x4x8x8xbf16, #tpu.memory_space<vmem>>, vector<1x1x8x8xbf16>,
    %83 = vector.extract_strided_slice %41 {offsets = [0, 16], sizes = [8, 8], strides = [1, 1]} : vector<8x32xbf16> to vector<8x8xbf16>
    %c0_52 = arith.constant 0 : index
    %c2_53 = arith.constant 2 : index
    %c0_54 = arith.constant 0 : index
    %c0_55 = arith.constant 0 : index
    %84 = vector.load %arg8[%c0_52, %c2_53, %c0_54, %c0_55] : memref<1x4x8x8xbf16, #tpu.memory_space<vmem>>, vector<1x1x8x8xbf16>
    %85 = vector.shape_cast %84 : vector<1x1x8x8xbf16> to vector<8x8xbf16>
    %86 = vector.shape_cast %83 : vector<8x8xbf16> to vector<1x1x8x8xbf16>
    tpu.vector_store %arg8[%c0_52, %c2_53, %c0_54, %c0_55], %86 {strides = array<i32>} : memref<1x4x8x8xbf16, #tpu.memory_space<vmem>>, vector<1x1x8x8xbf16>,
    %87 = vector.extract_strided_slice %42 {offsets = [0, 16], sizes = [8, 8], strides = [1, 1]} : vector<8x32xbf16> to vector<8x8xbf16>
    %c0_56 = arith.constant 0 : index
    %c2_57 = arith.constant 2 : index
    %c0_58 = arith.constant 0 : index
    %c0_59 = arith.constant 0 : index
    %88 = vector.load %arg9[%c0_56, %c2_57, %c0_58, %c0_59] : memref<1x4x8x8xbf16, #tpu.memory_space<vmem>>, vector<1x1x8x8xbf16>
    %89 = vector.shape_cast %88 : vector<1x1x8x8xbf16> to vector<8x8xbf16>
    %90 = vector.shape_cast %87 : vector<8x8xbf16> to vector<1x1x8x8xbf16>
    tpu.vector_store %arg9[%c0_56, %c2_57, %c0_58, %c0_59], %90 {strides = array<i32>} : memref<1x4x8x8xbf16, #tpu.memory_space<vmem>>, vector<1x1x8x8xbf16>,
    %91 = vector.extract_strided_slice %28 {offsets = [0, 2], sizes = [8, 1], strides = [1, 1]} : vector<8x4xf32> to vector<8x1xf32>
    %92 = vector.extract_strided_slice %39 {offsets = [0, 2], sizes = [8, 1], strides = [1, 1]} : vector<8x4xf32> to vector<8x1xf32>
    %93 = tpu.concatenate %91, %92 in 1 : vector<8x1xf32>, vector<8x1xf32> -> vector<8x2xf32>
    %c0_60 = arith.constant 0 : index
    %c2_61 = arith.constant 2 : index
    %c0_62 = arith.constant 0 : index
    %c0_63 = arith.constant 0 : index
    %94 = vector.load %arg10[%c0_60, %c2_61, %c0_62, %c0_63] : memref<1x4x8x2xf32, #tpu.memory_space<vmem>>, vector<1x1x8x2xf32>
    %95 = vector.shape_cast %94 : vector<1x1x8x2xf32> to vector<8x2xf32>
    %96 = vector.shape_cast %93 : vector<8x2xf32> to vector<1x1x8x2xf32>
    tpu.vector_store %arg10[%c0_60, %c2_61, %c0_62, %c0_63], %96 {strides = array<i32>} : memref<1x4x8x2xf32, #tpu.memory_space<vmem>>, vector<1x1x8x2xf32>,
    %97 = vector.extract_strided_slice %40 {offsets = [0, 24], sizes = [8, 8], strides = [1, 1]} : vector<8x32xbf16> to vector<8x8xbf16>
    %c0_64 = arith.constant 0 : index
    %c3 = arith.constant 3 : index
    %c0_65 = arith.constant 0 : index
    %c0_66 = arith.constant 0 : index
    %98 = vector.load %arg7[%c0_64, %c3, %c0_65, %c0_66] : memref<1x4x8x8xbf16, #tpu.memory_space<vmem>>, vector<1x1x8x8xbf16>
    %99 = vector.shape_cast %98 : vector<1x1x8x8xbf16> to vector<8x8xbf16>
    %100 = vector.shape_cast %97 : vector<8x8xbf16> to vector<1x1x8x8xbf16>
    tpu.vector_store %arg7[%c0_64, %c3, %c0_65, %c0_66], %100 {strides = array<i32>} : memref<1x4x8x8xbf16, #tpu.memory_space<vmem>>, vector<1x1x8x8xbf16>,
    %101 = vector.extract_strided_slice %41 {offsets = [0, 24], sizes = [8, 8], strides = [1, 1]} : vector<8x32xbf16> to vector<8x8xbf16>
    %c0_67 = arith.constant 0 : index
    %c3_68 = arith.constant 3 : index
    %c0_69 = arith.constant 0 : index
    %c0_70 = arith.constant 0 : index
    %102 = vector.load %arg8[%c0_67, %c3_68, %c0_69, %c0_70] : memref<1x4x8x8xbf16, #tpu.memory_space<vmem>>, vector<1x1x8x8xbf16>
    %103 = vector.shape_cast %102 : vector<1x1x8x8xbf16> to vector<8x8xbf16>
    %104 = vector.shape_cast %101 : vector<8x8xbf16> to vector<1x1x8x8xbf16>
    tpu.vector_store %arg8[%c0_67, %c3_68, %c0_69, %c0_70], %104 {strides = array<i32>} : memref<1x4x8x8xbf16, #tpu.memory_space<vmem>>, vector<1x1x8x8xbf16>,
    %105 = vector.extract_strided_slice %42 {offsets = [0, 24], sizes = [8, 8], strides = [1, 1]} : vector<8x32xbf16> to vector<8x8xbf16>
    %c0_71 = arith.constant 0 : index
    %c3_72 = arith.constant 3 : index
    %c0_73 = arith.constant 0 : index
    %c0_74 = arith.constant 0 : index
    %106 = vector.load %arg9[%c0_71, %c3_72, %c0_73, %c0_74] : memref<1x4x8x8xbf16, #tpu.memory_space<vmem>>, vector<1x1x8x8xbf16>
    %107 = vector.shape_cast %106 : vector<1x1x8x8xbf16> to vector<8x8xbf16>
    %108 = vector.shape_cast %105 : vector<8x8xbf16> to vector<1x1x8x8xbf16>
    tpu.vector_store %arg9[%c0_71, %c3_72, %c0_73, %c0_74], %108 {strides = array<i32>} : memref<1x4x8x8xbf16, #tpu.memory_space<vmem>>, vector<1x1x8x8xbf16>,
    %109 = vector.extract_strided_slice %28 {offsets = [0, 3], sizes = [8, 1], strides = [1, 1]} : vector<8x4xf32> to vector<8x1xf32>
    %110 = vector.extract_strided_slice %39 {offsets = [0, 3], sizes = [8, 1], strides = [1, 1]} : vector<8x4xf32> to vector<8x1xf32>
    %111 = tpu.concatenate %109, %110 in 1 : vector<8x1xf32>, vector<8x1xf32> -> vector<8x2xf32>
    %c0_75 = arith.constant 0 : index
    %c3_76 = arith.constant 3 : index
    %c0_77 = arith.constant 0 : index
    %c0_78 = arith.constant 0 : index
    %112 = vector.load %arg10[%c0_75, %c3_76, %c0_77, %c0_78] : memref<1x4x8x2xf32, #tpu.memory_space<vmem>>, vector<1x1x8x2xf32>
    %113 = vector.shape_cast %112 : vector<1x1x8x2xf32> to vector<8x2xf32>
    %114 = vector.shape_cast %111 : vector<8x2xf32> to vector<1x1x8x2xf32>
    tpu.vector_store %arg10[%c0_75, %c3_76, %c0_77, %c0_78], %114 {strides = array<i32>} : memref<1x4x8x2xf32, #tpu.memory_space<vmem>>, vector<1x1x8x2xf32>,
    return
  }
  func.func @transform_0(%arg0: i32, %arg1: i32) -> (i32, i32, i32) {
    %c0_i32 = arith.constant 0 : i32
    %c0_i32_0 = arith.constant 0 : i32
    return %arg0, %arg1, %c0_i32 : i32, i32, i32
  }
  func.func @transform_1(%arg0: i32, %arg1: i32) -> (i32, i32, i32) {
    %c0_i32 = arith.constant 0 : i32
    %c0_i32_0 = arith.constant 0 : i32
    %c0_i32_1 = arith.constant 0 : i32
    return %arg0, %c0_i32, %c0_i32_0 : i32, i32, i32
  }
  func.func @transform_2(%arg0: i32, %arg1: i32) -> (i32, i32) {
    %c0_i32 = arith.constant 0 : i32
    %c0_i32_0 = arith.constant 0 : i32
    %c0_i32_1 = arith.constant 0 : i32
    return %c0_i32, %c0_i32_0 : i32, i32
  }
  func.func @transform_3(%arg0: i32, %arg1: i32) -> (i32, i32) {
    %c0_i32 = arith.constant 0 : i32
    %c0_i32_0 = arith.constant 0 : i32
    %c0_i32_1 = arith.constant 0 : i32
    return %c0_i32, %c0_i32_0 : i32, i32
  }
  func.func @transform_4(%arg0: i32, %arg1: i32) -> (i32, i32) {
    %c0_i32 = arith.constant 0 : i32
    %c0_i32_0 = arith.constant 0 : i32
    %c0_i32_1 = arith.constant 0 : i32
    return %c0_i32, %c0_i32_0 : i32, i32
  }
  func.func @transform_5(%arg0: i32, %arg1: i32) -> (i32, i32, i32, i32) {
    %c0_i32 = arith.constant 0 : i32
    %c0_i32_0 = arith.constant 0 : i32
    %c0_i32_1 = arith.constant 0 : i32
    return %arg0, %c0_i32, %arg1, %c0_i32_0 : i32, i32, i32, i32
  }
  func.func @transform_6(%arg0: i32, %arg1: i32) -> (i32, i32, i32, i32) {
    %c0_i32 = arith.constant 0 : i32
    %c0_i32_0 = arith.constant 0 : i32
    %c0_i32_1 = arith.constant 0 : i32
    return %arg0, %c0_i32, %arg1, %c0_i32_0 : i32, i32, i32, i32
  }
  func.func @transform_7(%arg0: i32, %arg1: i32) -> (i32, i32, i32, i32) {
    %c0_i32 = arith.constant 0 : i32
    %c0_i32_0 = arith.constant 0 : i32
    %c0_i32_1 = arith.constant 0 : i32
    return %arg0, %c0_i32, %arg1, %c0_i32_0 : i32, i32, i32, i32
  }
  func.func @transform_8(%arg0: i32, %arg1: i32) -> (i32, i32, i32, i32) {
    %c0_i32 = arith.constant 0 : i32
    %c0_i32_0 = arith.constant 0 : i32
    %c0_i32_1 = arith.constant 0 : i32
    return %arg0, %c0_i32, %arg1, %c0_i32_0 : i32, i32, i32, i32
  }
}

</mosaic_0001>

<bundles_post_ra>
// kernel: tpu_custom_call.1
= control target key start
LH: loop header
LB: loop body
LE: loop exit
PB: predicated region body
PF: predicated region fallthrough
CT: control target
= control target key end

     0   :  { %s2169_s0 = inlined_call_operand.hbm [shape: bf16[2,8,32], index: 0, kind: input, shape index: {}]   ;;  %s2170_s1 = inlined_call_operand.hbm [shape: f32[2,1,32], index: 1, kind: input, shape index: {}]   ;;  %s2171_s2 = inlined_call_operand.hbm [shape: bf16[32,128], index: 2, kind: input, shape index: {}]   ;;  %s2172_s3 = inlined_call_operand.hbm [shape: f32[1,128], index: 3, kind: input, shape index: {}]   ;;  %s2173_s4 = inlined_call_operand.hbm [shape: bf16[32,8], index: 4, kind: input, shape index: {}]   ;;  %s2174_s5 = inlined_call_operand.hbm [shape: bf16[2,4,8,8], index: 5, kind: output, shape index: {0}]   ;;  %s2175_s6 = inlined_call_operand.hbm [shape: bf16[2,4,8,8], index: 6, kind: output, shape index: {1}]   ;;  %s2176_s7 = inlined_call_operand.hbm [shape: bf16[2,4,8,8], index: 7, kind: output, shape index: {2}]   ;;  %s2177_s8 = inlined_call_operand.hbm [shape: f32[2,4,8,2], index: 8, kind: output, shape index: {3}]  }
   0x1   :  { %2191 = sst [smem:[#allocation26_spill]] %s2169_s0 }
   0x2   :  { %2192 = sst [smem:[#allocation27_spill]] %s2170_s1 }
   0x3   :  { %2193 = sst [smem:[#allocation28_spill]] %s2171_s2 }
   0x4   :  { %2194 = sst [smem:[#allocation29_spill]] %s2174_s5 }
   0x5   :  { %2195 = sst [smem:[#allocation30_spill]] %s2176_s7 }
   0x6   :  { %14 = vsyncpa [#allocation3], 0 }
   0x7   :  { %16 = vsyncpa [#allocation3 + $0x1], 0 }
   0x8   :  { %17 = vsyncpa [#allocation6], 0 }
   0x9   :  { %19 = vsyncpa [#allocation6 + $0x1], 0 }
   0xa   :  { %20 = vsyncpa [#allocation9], 0 }
   0xb   :  { %21 = vsyncpa [#allocation4], 0 }
   0xc   :  { %23 = vsyncpa [#allocation4 + $0x1], 0 }
   0xd   :  { %24 = vsyncpa [#allocation13], 0 }
   0xe   :  { %26 = vsyncpa [#allocation13 + $0x1], 0 }
   0xf   :  { %27 = vsyncpa [#allocation16], 0 }
  0x10   :  { %29 = vsyncpa [#allocation16 + $0x1], 0  ;;  %s1657_s27 = smov 0   ;;  %s1659_s28 = smov 0  }
  0x11   :  { %s1661_s29 = smov 0   ;;  %s1663_s30 = smov 0  }
  0x12   :  { %s1665_s9 = smov 0   ;;  %s1667_s10 = smov 0  }
  0x13 LB: > { %2196 = sst [smem:[#allocation24_spill]] %s1556_s27  ;;  %s1688_s11 = sadd.s32 4294967295, %s1576_s10   ;;  %s1576_s10 = sphi %s1667_s10, %s35_s10   ;;  %s1572_s9 = sphi %s1665_s9, %s2232_s9   ;;  %s1568_s30 = sphi %s1663_s30, %s2231_s30   ;;  %s1564_s29 = sphi %s1661_s29, %s2230_s29   ;;  %s1560_s28 = sphi %s1659_s28, %s2229_s28   ;;  %s1556_s27 = sphi %s1657_s27, %s2228_s27  }
  0x14   : > { %s2178_s12 = sadd.s32 4294967294, %s1576_s10   ;;  %p69_p0 = scmp.ne.s32.totalorder %s1560_s28, %s1556_s27 }
  0x15   : > { %p2179_p1 = scmp.eq.s32.totalorder %s1688_s11, 0  ;;  %p190_p3 = scmp.eq.s32.totalorder %s2178_s12, 1 }
  0x16   : > { %p1014_p5 = scmp.ge.s32.totalorder %s1576_s10, 1  ;;  %p281_p7 = scmp.lt.s32.totalorder %s1576_s10, 3 }
  0x17   : > { %p1699_p4 = por %p2179_p1, %p69_p0  ;;  %p1704_p6 = por %p190_p3, %p69_p0 }
  0x18   : > { %p1709_p8 = pnand %p1014_p5, %p281_p7  ;;  %s1578_s16 = smov [#allocation7]  }
  0x19   : > { %s2197_s13 = scalar_select %p1699_p4, 1, 0 }
  0x1a   : > { %s2198_s14 = scalar_select %p1704_p6, 1, 0 }
  0x1b   : > { %s2200_s15 = scalar_select %p1709_p8, 1, 0 }
  0x1c   : > { %2199 = sst [smem:[#allocation25_spill]] %s2198_s14  ;;  %s293_s17 = sshll.u32 %s1578_s16, 4  ;;  %s1713_s17 = int_to_ptr.vmem [resolvable:$true] %s293_s17 }
  0x1d   : > { %p1120_p9 = pneg %p1709_p8  ;;  %s1579_s19 = smov [#allocation8]  }
  0x1e   : > { %s307_s20 = sshll.u32 %s1579_s19, 4  ;;  %s1580_s21 = smov [#allocation10]   ;;  %s1724_s20 = int_to_ptr.vmem [resolvable:$true] %s307_s20 }
  0x1f   : > { %p1720_p11 = pnand %p1120_p9, %p2179_p1  ;;  %s1726_s22 = sshll.u32 %s1580_s21, 4  ;;  %s318_s22 = int_to_ptr.vmem [resolvable:$true] %s1726_s22 }
  0x20   : > { %s2202_s2 = sld [smem:[#allocation28_spill]] }
  0x21   : > { %p1736_p13 = pneg %p1720_p11 }
  0x26   : > { %s1246_s25 = scalar_lea.hbm %s2202_s2, 256 }
  0x27   : > { %p1247_p12 = scmp.ne.s32.totalorder %s2202_s2, %s1246_s25  ;;  %p1253_p5 = scmp.lt.u32.totalorder %s1246_s25, %s2202_s2 }
  0x29   : > { %p1249_p0 = pnand %p1736_p13, %p1247_p12 }
  0x2b   : > { %p1250_p3 = pneg %p1249_p0 }
  0x2d   : > { %p1255_p7 = pnand %p1253_p5, %p1250_p3 }
  0x2f   : > { %1258 = shalt.err (!%p1255_p7)
}
  0x30   : > { %s1259_s23 = scalar_lea.vmem %s1713_s17, 256  ;;  %p1267_p2 = scmp.lt.s32.totalorder %s1713_s17, %s1713_s17 }
  0x31   : > { %p1260_p9 = scmp.ne.s32.totalorder %s1713_s17, %s1259_s23  ;;  %p1268_p6 = scmp.lt.s32.totalorder %s1259_s23, %s1259_s23 }
  0x33   : > { %p1262_p10 = pnand %p1260_p9, %p1736_p13  ;;  %p1269_p12 = por %p1268_p6, %p1267_p2 }
  0x35   : > { %p1263_p1 = pneg %p1262_p10 }
  0x37   : > { %p1270_p0 = pnand %p1269_p12, %p1263_p1 }
  0x39   : > { %1273 = shalt.err (!%p1270_p0)
}
  0x3a   : > { %s1581_s24 = smov 64   ;;  %s1582_s25 = smov 4  }
  0x3b   : > { %1123 = dma.hbm_to_vmem [thread:$0]  (!%p1720_p11), %s2202_s2, 256, %s1713_s17, [#allocation6], %s1581_s24, %s1581_s24, %s1582_s25  }
  0x3c   : > { %s1274_s23 = scalar_lea.hbm %s2172_s3, 16 }
  0x3d   : > { %p1275_p1 = scmp.ne.s32.totalorder %s2172_s3, %s1274_s23  ;;  %p1281_p10 = scmp.lt.u32.totalorder %s1274_s23, %s2172_s3 }
  0x3f   : > { %p1277_p2 = pnand %p1275_p1, %p1736_p13 }
  0x41   : > { %p1278_p6 = pneg %p1277_p2 }
  0x43   : > { %p1283_p3 = pnand %p1281_p10, %p1278_p6 }
  0x45   : > { %1286 = shalt.err (!%p1283_p3)
}
  0x46   : > { %s1287_s17 = scalar_lea.vmem %s1724_s20, 16  ;;  %s1294_s27 = scalar_lea.vmem %s1724_s20, 32 }
  0x47   : > { %p1288_p5 = scmp.ne.s32.totalorder %s1724_s20, %s1287_s17  ;;  %p1295_p12 = scmp.lt.s32.totalorder %s1724_s20, %s1724_s20 }
  0x48   : > { %p1296_p0 = scmp.lt.s32.totalorder %s1294_s27, %s1287_s17 }
  0x49   : > { %p1290_p7 = pnand %p1288_p5, %p1736_p13 }
  0x4a   : > { %p1297_p1 = por %p1296_p0, %p1295_p12 }
  0x4b   : > { %p1291_p9 = pneg %p1290_p7 }
  0x4d   : > { %p1298_p2 = pnand %p1297_p1, %p1291_p9 }
  0x4f   : > { %1301 = shalt.err (!%p1298_p2)
}
  0x50   : > { %1126 = dma.hbm_to_vmem [thread:$0]  (!%p1720_p11), %s2172_s3, 16, %s1724_s20, [#allocation9]  }
  0x51   : > { %s1302_s16 = scalar_lea.hbm %s2173_s4, 256 }
  0x52   : > { %p1303_p6 = scmp.ne.s32.totalorder %s2173_s4, %s1302_s16  ;;  %p1309_p5 = scmp.lt.u32.totalorder %s1302_s16, %s2173_s4 }
  0x54   : > { %p1305_p10 = pnand %p1303_p6, %p1736_p13 }
  0x56   : > { %p1306_p3 = pneg %p1305_p10 }
  0x58   : > { %p1311_p7 = pnand %p1309_p5, %p1306_p3 }
  0x5a   : > { %1314 = shalt.err (!%p1311_p7)
}
  0x5b   : > { %s1315_s27 = scalar_lea.vmem %s318_s22, 256  ;;  %p1323_p1 = scmp.lt.s32.totalorder %s318_s22, %s318_s22 }
  0x5c   : > { %p1316_p9 = scmp.ne.s32.totalorder %s318_s22, %s1315_s27  ;;  %p1324_p2 = scmp.lt.s32.totalorder %s1315_s27, %s1315_s27 }
  0x5e   : > { %p1318_p12 = pnand %p1316_p9, %p1736_p13  ;;  %p1325_p4 = por %p1324_p2, %p1323_p1 }
  0x60   : > { %p1319_p0 = pneg %p1318_p12 }
  0x62   : > { %p1326_p8 = pnand %p1325_p4, %p1319_p0 }
  0x64   : > { %1329 = shalt.err (!%p1326_p8)
}
  0x65   : > { %1129 = dma.hbm_to_vmem [thread:$0]  (!%p1720_p11), %s2173_s4, 256, %s318_s22, [#allocation9], %s1581_s24, %s1581_s24, %s1582_s25  }
  0x66   : > { %s56_s12 = sadd.s32 1, %s1564_s29  ;;  %s47_s18 = sadd.s32 1, %s1572_s9 }
  0x67   : > { %p63_p4 = scmp.ne.s32.totalorder %s1564_s29, %s1560_s28  ;;  %p49_p8 = scmp.ge.s32.totalorder %s47_s18, 2 }
  0x68   : > { %p64_p13 = scmp.eq.s32.totalorder %s1576_s10, 0  ;;  %p2204_p6 = scmp.eq.s32.totalorder %s1688_s11, 1 }
  0x69   : > { %p1153_p3 = scmp.lt.s32.totalorder %s1576_s10, 2  ;;  %s2234_s18 = smov (%p49_p8, %s47_s18), 0 }
  0x6a   : > { %p1813_p10 = por %p2204_p6, %p63_p4  ;;  %p65_p5 = por %p64_p13, %p63_p4 }
  0x6b   : > { %s1821_s14 = sand.u32 1, %s1564_s29   ;;  %s51_s22 = ssub.s32 %s1572_s9, %s2234_s18 }
  0x6c   : > { %s2205_s7 = scalar_select %p1813_p10, 1, 0 }
  0x6d   : > { %p54_p11 = scmp.eq.s32.totalorder %s51_s22, 0  ;;  %s1019_s24 = sshll.u32 %s1821_s14, 2 }
  0x6e   : > { %s1020_s25 = sshll.u32 %s1572_s9, 6  ;;  %s2206_s0 = sld [smem:[#allocation26_spill]] }
  0x6f   : > { %s1828_s26 = scalar_select %p54_p11, %s1564_s29, %s56_s12  }
  0x70   : > { %s335_s23 = scalar_lea.vmem [#allocation2], %s1019_s24  ;;  %p1839_p7 = pnand %p1153_p3, %p65_p5 }
  0x71   : > { %s343_s17 = sshll.u32 %s335_s23, 4  ;;  %s332_s5 = scalar_lea.sflag [#allocation3], %s1821_s14  ;;  %s1835_s17 = int_to_ptr.vmem [resolvable:$true] %s343_s17 }
  0x72   : > { %p1332_p12 = pneg %p1839_p7 }
  0x74   : > { %s1833_s21 = scalar_lea.hbm %s2206_s0, %s1020_s25  ;;  %s1335_s25 = scalar_lea.hbm %s2206_s0, 128 }
  0x75   : > { %s1330_s12 = scalar_lea.hbm %s1833_s21, 64  ;;  %p1336_p2 = scmp.lt.u32.totalorder %s1833_s21, %s2206_s0 }
  0x76   : > { %p1331_p9 = scmp.ne.s32.totalorder %s1833_s21, %s1330_s12  ;;  %p1337_p4 = scmp.lt.u32.totalorder %s1335_s25, %s1330_s12 }
  0x77   : > { %p1339_p13 = scmp.lt.u32.totalorder %s1330_s12, %s1833_s21 }
  0x78   : > { %p1333_p0 = pnand %p1332_p12, %p1331_p9  ;;  %p1338_p8 = por %p1337_p4, %p1336_p2 }
  0x7a   : > { %p1334_p1 = pneg %p1333_p0  ;;  %p1340_p6 = por %p1339_p13, %p1338_p8 }
  0x7c   : > { %p1341_p3 = pnand %p1340_p6, %p1334_p1 }
  0x7e   : > { %1344 = shalt.err (!%p1341_p3)
}
  0x7f   : > { %s1345_s23 = scalar_lea.vmem %s1835_s17, 64  ;;  %s1583_s22 = smov [#allocation2]  }
  0x80   : > { %p1346_p5 = scmp.ne.s32.totalorder %s1835_s17, %s1345_s23  ;;  %s1350_s24 = sshll.u32 %s1583_s22, 4  ;;  %s1351_s24 = int_to_ptr.vmem [resolvable:$false] %s1350_s24 }
  0x81   : > { %s1352_s16 = scalar_lea.vmem %s1351_s24, 128  ;;  %p1353_p0 = scmp.lt.s32.totalorder %s1835_s17, %s1351_s24 }
  0x82   : > { %p1348_p11 = pnand %p1346_p5, %p1332_p12  ;;  %p1354_p2 = scmp.lt.s32.totalorder %s1352_s16, %s1345_s23 }
  0x84   : > { %p1349_p9 = pneg %p1348_p11  ;;  %p1355_p4 = por %p1354_p2, %p1353_p0 }
  0x86   : > { %p1356_p8 = pnand %p1355_p4, %p1349_p9 }
  0x88   : > { %1359 = shalt.err (!%p1356_p8)
}
  0x89   : > { %1133 = dma.hbm_to_vmem [thread:$0]  (!%p1839_p7), %s1833_s21, 64, %s1835_s17, %s332_s5  }
  0x8a   : > { %s1021_s12 = sshll.u32 %s1572_s9, 4  ;;  %s353_s25 = scalar_lea.vmem [#allocation5], %s1821_s14 }
  0x8b   : > { %s360_s19 = sshll.u32 %s353_s25, 4  ;;  %s2208_s1 = sld [smem:[#allocation27_spill]]  ;;  %s361_s19 = int_to_ptr.vmem [resolvable:$true] %s360_s19 }
  0x8c   : > { %s2209_s23 = sand.u32 1, %s1576_s10  }
  0x8d   : > { %s351_s16 = scalar_lea.sflag [#allocation6], %s2209_s23 }
  0x91   : > { %s1875_s24 = scalar_lea.hbm %s2208_s1, %s1021_s12  ;;  %s1365_s17 = scalar_lea.hbm %s2208_s1, 32 }
  0x92   : > { %s1360_s0 = scalar_lea.hbm %s1875_s24, 16  ;;  %p1366_p3 = scmp.lt.u32.totalorder %s1875_s24, %s2208_s1 }
  0x93   : > { %p1361_p1 = scmp.ne.s32.totalorder %s1875_s24, %s1360_s0  ;;  %p1367_p5 = scmp.lt.u32.totalorder %s1365_s17, %s1360_s0 }
  0x94   : > { %p1369_p9 = scmp.lt.u32.totalorder %s1360_s0, %s1875_s24 }
  0x95   : > { %p1363_p13 = pnand %p1361_p1, %p1332_p12  ;;  %p1368_p11 = por %p1367_p5, %p1366_p3 }
  0x97   : > { %p1364_p6 = pneg %p1363_p13  ;;  %p1370_p0 = por %p1369_p9, %p1368_p11 }
  0x99   : > { %p1371_p2 = pnand %p1370_p0, %p1364_p6 }
  0x9b   : > { %1374 = shalt.err (!%p1371_p2)
}
  0x9c   : > { %s1375_s12 = scalar_lea.vmem %s361_s19, 16  ;;  %s1584_s25 = smov [#allocation5]  }
  0x9d   : > { %p1376_p4 = scmp.ne.s32.totalorder %s361_s19, %s1375_s12  ;;  %s1380_s22 = sshll.u32 %s1584_s25, 4  ;;  %s1381_s22 = int_to_ptr.vmem [resolvable:$false] %s1380_s22 }
  0x9e   : > { %s1382_s23 = scalar_lea.vmem %s1381_s22, 32  ;;  %p1383_p13 = scmp.lt.s32.totalorder %s361_s19, %s1381_s22 }
  0x9f   : > { %p1378_p8 = pnand %p1376_p4, %p1332_p12  ;;  %p1384_p10 = scmp.lt.s32.totalorder %s1382_s23, %s1375_s12 }
  0xa1   : > { %p1379_p1 = pneg %p1378_p8  ;;  %p1385_p3 = por %p1384_p10, %p1383_p13 }
  0xa3   : > { %p1386_p5 = pnand %p1385_p3, %p1379_p1 }
  0xa5   : > { %1389 = shalt.err (!%p1386_p5)
}
  0xa6   : > { %1136 = dma.hbm_to_vmem [thread:$0]  (!%p1839_p7), %s1875_s24, 16, %s361_s19, %s351_s16  }
  0xa7   : > { %p2210_p6 = scmp.ne.s32.totalorder %s2200_s15, 0 }
  0xa8   : > { %s1901_s0 = sand.u32 (!%p2210_p6), 1, %s1560_s28   ;;  %p2211_p12 = scmp.ne.s32.totalorder (!%p2210_p6), %s2197_s13, 0 }
  0xa9   : > { %369 = sbr.rel (%p2210_p6) target bundleno = 987 (0x3db), region = 40  ;;  %s1023_s14 = sshll.u32 (!%p2210_p6), %s1901_s0, 2 }
  0xaa   : > { %s372_s21 = scalar_lea.sflag (!%p2210_p6), [#allocation3], %s1901_s0  ;;  %s375_s17 = scalar_lea.vmem (!%p2210_p6), [#allocation2], %s1023_s14 }
  0xb0   : > { %1527 = dma.done.wait (%p2211_p12), %s372_s21, 64  }
  0xb1   : > { %1529 = vsyncadd (%p2211_p12), %s372_s21, 4294967232  ;;  %s380_s15 = sand.u32 1, %s1688_s11   ;;  %s383_s19 = scalar_lea.vmem [#allocation5], %s1901_s0 }
  0xb2   : > { %s381_s27 = scalar_lea.sflag [#allocation6], %s380_s15 }
  0xb3   : > { %1531 = dma.done.wait (%p2211_p12), %s381_s27, 16  }
  0xb4   : > { %1533 = vsyncadd (%p2211_p12), %s381_s27, 4294967280  ;;  %p2212_p10 = scmp.eq.s32.totalorder %s1688_s11, 0 }
  0xb6   : > { %1535 = dma.done.wait (%p2212_p10), [#allocation6], 256   ;;  %p2213_p7 = pmov %p2212_p10 }
  0xb8   : > { %1537 = vsyncadd (%p2213_p7), [#allocation6], 4294967040  ;;  %p2214_p11 = pmov %p2213_p7 }
  0xb9   : > { %p2215_p9 = pmov %p2213_p7 }
  0xba   : > { %1539 = dma.done.wait (%p2214_p11), [#allocation9], 272  }
  0xbb   : > { %1541 = vsyncadd (%p2215_p9), [#allocation9], 4294967024  ;;  %v1585_v0 = vmov 0.0   ;;  %vm1586_vm0 = vmmov 0   ;;  %v1234_v1 = vld [vmem:[#allocation7] sm:$0xff]   ;;  %v1235_v2 = vld [vmem:[#allocation7 + $0x8] sm:$0xff]  }
  0xbc   : > { %1080 = vmatprep.subr.bf16.mxu0 %v1585_v0  ;;  %1084 = vmatprep.mubr.msk.bf16.mxu0 %vm1586_vm0, %v1585_v0  ;;  %v1035_v3 = vld [vmem:[%s383_s19] ss:$0 sm:$0xff]  ;;  %s1587_s13 = smov 96   ;;  %vm472_vm1 = vcmask 261120   ;;  %v1031_v6 = vld [vmem:[#allocation8] ss:$0 sm:$0xff] }
  0xbd   : > { %1088 = vmatprep.subr.bf16.mxu1 %v1585_v0  ;;  %1092 = vmatprep.mubr.msk.bf16.mxu1 %vm1586_vm0, %v1585_v0  ;;  %v448_v4 = vld [vmem:[%s375_s17] sm:$0xf]  ;;  %s1927_s24 = sshll.u32 %s1901_s0, 4  ;;  %vm603_vm2 = vcmask 60416   ;;  %s1588_s20 = smov 80  }
  0xbe   : > { %1081 = vmatpush3.bf16.msra.mxu0 %v1234_v1  ;;  %523 = vrot.lane.b32.xlu0 %v1035_v3, %s1587_s13  ;;  %v1236_v5 = vld [vmem:[#allocation10] sm:$0xff]   ;;  %v1237_v9 = vld [vmem:[#allocation10 + $0x8] sm:$0xff]   ;;  %s1935_s16 = scalar_lea.vmem [#allocation11], %s1927_s24  ;;  %s2187_s5 = smov 64  }
  0xbf   : > { %1082 = vmatprep.subr.bf16.mxu0 %v1585_v0  ;;  %1089 = vmatpush3.bf16.msra.mxu1 %v1236_v5  ;;  %s1590_s12 = smov 56   ;;  %s1591_s25 = smov 32  }
  0xc0   : > { %1090 = vmatprep.subr.bf16.mxu1 %v1585_v0  ;;  %s1592_s22 = smov 48   ;;  %s1593_s23 = smov 88  }
  0xc1   : > { %s1594_s14 = smov 72   ;;  %s1595_s21 = smov 120  }
  0xc2   : > { %1083 = vmatpush3.bf16.msra.mxu0 %v1235_v2  ;;  %s1596_s17 = smov 112   ;;  %s1950_s27 = scalar_lea.vmem [#allocation12], %s1927_s24 }
  0xc3   : > { %1091 = vmatpush3.bf16.msra.mxu1 %v1237_v9  ;;  %s1957_s19 = scalar_lea.vmem [#allocation14], %s1927_s24  ;;  %s1598_s24 = smov 126  }
  0xc4   : > { %p2216_p2 = scmp.ne.s32.totalorder %s2205_s7, 0 }
  0xc5   : > { %1085 = vmatmul.mubr.msk.bf16.vlgmr.msra.gmra.mrb[0].mxu0 %vm472_vm1, %v448_v4 }
 0x130   : > { %v524_v8 = vpop.permute.xlu0 %523 }
 0x198   : > { %v510_v7 = vpop.f32.mrb[0].mxu0 }
 0x199   : > { %v511_v10 = vadd.f32 %v1031_v6, %v510_v7  ;;  %v1086_v11 = vpop.f32.mrb[1].mxu0 }
 0x19a   : > { %v513_v12 = vpop.f32.mrb[2].mxu0 }
 0x19b   : > { %v516_v13 = vmul.f32 0.35355338, %v511_v10  ;;  %v1929_v14 = vpack.c.bf16 %v511_v10, %v511_v10  ;;  %v526_v15 = vadd.f32 %v524_v8, %v511_v10  ;;  %v1087_v16 = vpop.f32.mrb[3].mxu0 }
 0x19d   : > { %v1931_v17 = vpack.c.bf16 %v516_v13, %v516_v13  ;;  %1238 = vtanh.f32 %v526_v15  ;;  %608 = vrot.lane.b32.xlu1 %v1929_v14, %s1587_s13  ;;  %s1597_s13 = smov 127  }
 0x19f   : > { %604 = vst.msk [vmem:[%s1935_s16] sm:$0xf] %vm603_vm2, %v1931_v17 }
 0x1a1   : > { %657 = vrot.lane.b32.xlu1 %v1929_v14, %s1588_s20  ;;  %s1599_s20 = smov 125  }
 0x1a5   : > { %612 = vrot.lane.b32.xlu1 %v1929_v14, %s2187_s5 }
 0x1a7   : > { %v1239_v18 = vpop.eup %1238 }
 0x1a8   : > { %v528_v19 = vpack.c.bf16 %v1239_v18, %v1239_v18 }
 0x1a9   : > { %637 = vrot.lane.b32.xlu1 %v1929_v14, %s1590_s12  ;;  %s747_s12 = sshll.u32 %s1950_s27, 4  ;;  %s1983_s12 = int_to_ptr.vmem [resolvable:$true] %s747_s12 }
 0x1aa   : > { %534 = vrot.lane.b32.xlu0 %v528_v19, %s1591_s25  ;;  %s1986_s25 = sshll.u32 %s1568_s30, 8 }
 0x1ad   : > { %662 = vrot.lane.b32.xlu1 %v1929_v14, %s1592_s22 }
 0x1ae   : > { %632 = vrot.lane.b32.xlu0 %v1929_v14, %s1593_s23 }
 0x1b2   : > { %681 = vrot.lane.b32.xlu0 %v1929_v14, %s1594_s14  ;;  %s1992_s14 = scalar_lea.hbm %s2175_s6, %s1986_s25 }
 0x1b6   : > { %627 = vrot.lane.b32.xlu0 %v1931_v17, %s1595_s21  ;;  %s1996_s21 = scalar_lea.sflag [#allocation13], %s380_s15 }
 0x1ba   : > { %652 = vrot.lane.b32.xlu0 %v1931_v17, %s1596_s17  ;;  %s1390_s17 = scalar_lea.vmem %s1983_s12, 256 }
 0x1bb   : > { %p1391_p0 = scmp.ne.s32.totalorder %s1983_s12, %s1390_s17 }
 0x1bd   : > { %p1392_p4 = pnand %p1391_p0, %p2216_p2 }
 0x1bf   : > { %p1393_p8 = pneg %p1392_p4 }
 0x20f   : > { %v609_v20 = vpop.permute.xlu1 %608 }
 0x210   : > { %611 = vst.msk [vmem:[%s1950_s27] sm:$0xf] %vm603_vm2, %v609_v20 }
 0x213   : > { %v658_v21 = vpop.permute.xlu1 %657 }
 0x214   : > { %1047 = vst.msk [vmem:[%s1950_s27 + $0x8] sm:$0xf] %vm603_vm2, %v658_v21 }
 0x217   : > { %v613_v22 = vpop.permute.xlu1 %612 }
 0x218   : > { %615 = vst.msk [vmem:[%s1957_s19] sm:$0xf] %vm603_vm2, %v613_v22 }
 0x21b   : > { %v638_v23 = vpop.permute.xlu1 %637 }
 0x21c   : > { %1044 = vst.msk [vmem:[%s1957_s19 + $0x4] sm:$0xf] %vm603_vm2, %v638_v23  ;;  %v535_v24 = vpop.permute.xlu0 %534 }
 0x21d   : > { %1093 = vmatmul.mubr.msk.bf16.vlgmr.msra.gmra.mrb[0].mxu1 %vm472_vm1, %v535_v24 }
 0x21f   : > { %v663_v25 = vpop.permute.xlu1 %662 }
 0x220   : > { %1048 = vst.msk [vmem:[%s1957_s19 + $0x8] sm:$0xf] %vm603_vm2, %v663_v25  ;;  %v633_v26 = vpop.permute.xlu0 %632 }
 0x221   : > { %1043 = vst.msk [vmem:[%s1950_s27 + $0x4] sm:$0xf] %vm603_vm2, %v633_v26 }
 0x224   : > { %v682_v27 = vpop.permute.xlu0 %681 }
 0x225   : > { %1051 = vst.msk [vmem:[%s1950_s27 + $0xc] sm:$0xf] %vm603_vm2, %v682_v27  ;;  %s1600_s27 = smov [#allocation12]  }
 0x228   : > { %v628_v28 = vpop.permute.xlu0 %627 }
 0x229   : > { %1042 = vst.msk [vmem:[%s1935_s16 + $0x4] sm:$0xf] %vm603_vm2, %v628_v28 }
 0x22c   : > { %v653_v29 = vpop.permute.xlu0 %652 }
 0x22d   : > { %1046 = vst.msk [vmem:[%s1935_s16 + $0x8] sm:$0xf] %vm603_vm2, %v653_v29 }
 0x2f0   : > { %v585_v30 = vpop.f32.mrb[0].mxu1 }
 0x2f1   : > { %v1039_v31 = vmul.f32 -1.442695, %v585_v30  ;;  %v1094_v32 = vpop.f32.mrb[1].mxu1 }
 0x2f2   : > { %v588_v33 = vpop.f32.mrb[2].mxu1 }
 0x2f3   : > { %1240 = vpow2.f32 %v1039_v31  ;;  %v1095_v34 = vpop.f32.mrb[3].mxu1 }
 0x2fd   : > { %v1241_v35 = vpop.eup %1240 }
 0x2fe   : > { %v594_v36 = vadd.f32 1.0, %v1241_v35 }
 0x300   : > { %1242 = vrcp.f32 %v594_v36 }
 0x30a   : > { %v1243_v37 = vpop.eup %1242 }
 0x30b   : > { %v1974_v38 = vmul.f32 8.0, %v1243_v37 }
 0x30d   : > { %643 = vrot.lane.b32.xlu1 %v1974_v38, %s1597_s13  ;;  %667 = vrot.lane.b32.xlu0 %v1974_v38, %s1598_s24  ;;  %v598_v39 = vmul.f32 %v1974_v38, %v1974_v38  ;;  %s1394_s13 = sshll.u32 %s1600_s27, 4  ;;  %s1395_s13 = int_to_ptr.vmem [resolvable:$false] %s1394_s13 }
 0x30e   : > { %s1396_s24 = scalar_lea.vmem %s1395_s13, 512  ;;  %p1397_p1 = scmp.lt.s32.totalorder %s1983_s12, %s1395_s13 }
 0x30f   : > { %1244 = vrcp.f32 %v598_v39  ;;  %p1398_p13 = scmp.lt.s32.totalorder %s1396_s24, %s1390_s17 }
 0x311   : > { %691 = vrot.lane.b32.xlu1 %v1974_v38, %s1599_s20  ;;  %p1399_p3 = por %p1398_p13, %p1397_p1 }
 0x313   : > { %p1400_p5 = pnand %p1399_p3, %p1393_p8 }
 0x315   : > { %1403 = shalt.err (!%p1400_p5)
}
 0x316   : > { %s1404_s11 = scalar_lea.hbm %s1992_s14, 256  ;;  %s1408_s23 = scalar_lea.hbm %s2175_s6, 512 }
 0x317   : > { %p1405_p6 = scmp.ne.s32.totalorder %s1992_s14, %s1404_s11  ;;  %p1409_p7 = scmp.lt.u32.totalorder %s1992_s14, %s2175_s6 }
 0x318   : > { %p1410_p11 = scmp.lt.u32.totalorder %s1408_s23, %s1404_s11  ;;  %p1412_p0 = scmp.lt.u32.totalorder %s1404_s11, %s1992_s14 }
 0x319   : > { %p1406_p12 = pnand %p1405_p6, %p2216_p2 }
 0x31a   : > { %p1411_p9 = por %p1410_p11, %p1409_p7 }
 0x31b   : > { %p1407_p10 = pneg %p1406_p12 }
 0x31c   : > { %p1413_p4 = por %p1412_p0, %p1411_p9 }
 0x31e   : > { %p1414_p8 = pnand %p1413_p4, %p1407_p10 }
 0x320   : > { %1417 = shalt.err (!%p1414_p8)
}
 0x321   : > { %s2189_s17 = smov 4   ;;  %v1245_v40 = vpop.eup %1244  ;;  %s1602_s24 = smov 124   ;;  %vm620_vm3 = vcmask 7168   ;;  %vm622_vm4 = vcmask 15360  }
 0x322   : > { %1113 = dma.vmem_to_hbm [thread:$0]  (%p2216_p2), %s1983_s12, 256, %s1992_s14, %s1996_s21, %s2187_s5, %s2187_s5, %s2189_s17   ;;  %v600_v41 = vmul.f32 -2.0, %v1245_v40 }
 0x323   : > { %s1603_s11 = smov 123   ;;  %s1604_s15 = smov 122  }
 0x324   : > { %617 = vrot.lane.b32.xlu1 %v600_v41, %s1599_s20  ;;  %646 = vrot.lane.b32.xlu0 %v600_v41, %s1602_s24  ;;  %s1605_s22 = smov 40   ;;  %s1606_s23 = smov 104  }
 0x325   : > { %s1030_s12 = sshll.u32 %s1901_s0, 5  ;;  %s1073_s27 = sshll.u32 %s1568_s30, 9 }
 0x326   : > { %s446_s20 = scalar_lea.vmem [#allocation15], %s1030_s12  ;;  %s730_s13 = sshll.u32 %s1935_s16, 4  ;;  %s2042_s13 = int_to_ptr.vmem [resolvable:$true] %s730_s13 }
 0x327   : > { %s781_s14 = sshll.u32 %s446_s20, 4  ;;  %s2039_s30 = scalar_lea.hbm %s2177_s8, %s1073_s27  ;;  %s2032_s14 = int_to_ptr.vmem [resolvable:$true] %s781_s14 }
 0x328   : > { %670 = vrot.lane.b32.xlu1 %v600_v41, %s1603_s11  ;;  %694 = vrot.lane.b32.xlu0 %v600_v41, %s1604_s15  ;;  %s2217_s12 = sld [smem:[#allocation29_spill]]  ;;  %s1418_s11 = scalar_lea.vmem %s2032_s14, 512 }
 0x329   : > { %p1419_p1 = scmp.ne.s32.totalorder %s2032_s14, %s1418_s11  ;;  %s1607_s5 = smov [#allocation15]  }
 0x32a   : > { %s1422_s17 = sshll.u32 %s1607_s5, 4  ;;  %s1423_s17 = int_to_ptr.vmem [resolvable:$false] %s1422_s17 }
 0x32b   : > { %p1420_p13 = pnand %p1419_p1, %p2216_p2  ;;  %s1424_s15 = scalar_lea.vmem %s1423_s17, 1024 }
 0x32c   : > { %686 = vrot.lane.b32.xlu1 %v1929_v14, %s1605_s22  ;;  %676 = vrot.lane.b32.xlu0 %v1931_v17, %s1606_s23  ;;  %p1425_p5 = scmp.lt.s32.totalorder %s2032_s14, %s1423_s17  ;;  %p1426_p6 = scmp.lt.s32.totalorder %s1424_s15, %s1418_s11 }
 0x32d   : > { %p1421_p3 = pneg %p1420_p13 }
 0x32e   : > { %s2052_s24 = scalar_lea.hbm %s2217_s12, %s1986_s25  ;;  %p1427_p12 = por %p1426_p6, %p1425_p5 }
 0x330   : > { %p1428_p10 = pnand %p1427_p12, %p1421_p3 }
 0x37f   : > { %v644_v42 = vpop.permute.xlu1 %643  ;;  %v668_v43 = vpop.permute.xlu0 %667 }
 0x383   : > { %v692_v44 = vpop.permute.xlu1 %691 }
 0x396   : > { %v618_v45 = vpop.permute.xlu1 %617  ;;  %v647_v46 = vpop.permute.xlu0 %646 }
 0x397   : > { %v621_v47 = vsel %vm620_vm3, %v1974_v38, %v618_v45  ;;  %v649_v48 = vsel %vm620_vm3, %v644_v42, %v647_v46 }
 0x398   : > { %623 = vst.msk [vmem:[%s446_s20] sm:$0xff] %vm622_vm4, %v621_v47  ;;  %1045 = vst.msk [vmem:[%s446_s20 + $0x8] sm:$0xff] %vm622_vm4, %v649_v48 }
 0x39a   : > { %v671_v49 = vpop.permute.xlu1 %670  ;;  %v695_v50 = vpop.permute.xlu0 %694 }
 0x39b   : > { %v673_v51 = vsel %vm620_vm3, %v668_v43, %v671_v49  ;;  %v697_v52 = vsel %vm620_vm3, %v692_v44, %v695_v50 }
 0x39c   : > { %1049 = vst.msk [vmem:[%s446_s20 + $0x10] sm:$0xff] %vm622_vm4, %v673_v51  ;;  %1053 = vst.msk [vmem:[%s446_s20 + $0x18] sm:$0xff] %vm622_vm4, %v697_v52 }
 0x39d   : > { %1431 = shalt.err (!%p1428_p10)
}
 0x39e   : > { %s1432_s20 = scalar_lea.hbm %s2039_s30, 512  ;;  %s1436_s5 = scalar_lea.hbm %s2177_s8, 1024 }
 0x39f   : > { %p1433_p7 = scmp.ne.s32.totalorder %s2039_s30, %s1432_s20  ;;  %p1437_p0 = scmp.lt.u32.totalorder %s2039_s30, %s2177_s8 }
 0x3a0   : > { %p1438_p4 = scmp.lt.u32.totalorder %s1436_s5, %s1432_s20  ;;  %p1440_p1 = scmp.lt.u32.totalorder %s1432_s20, %s2039_s30 }
 0x3a1   : > { %p1434_p11 = pnand %p1433_p7, %p2216_p2 }
 0x3a2   : > { %p1439_p8 = por %p1438_p4, %p1437_p0 }
 0x3a3   : > { %p1435_p9 = pneg %p1434_p11 }
 0x3a4   : > { %p1441_p13 = por %p1440_p1, %p1439_p8 }
 0x3a6   : > { %p1442_p3 = pnand %p1441_p13, %p1435_p9 }
 0x3a8   : > { %1445 = shalt.err (!%p1442_p3)
}
 0x3a9   : > { %s1608_s15 = smov 128   ;;  %s1609_s27 = smov 8   ;;  %v687_v53 = vpop.permute.xlu1 %686  ;;  %v677_v54 = vpop.permute.xlu0 %676 }
 0x3aa   : > { %s2218_s11 = scalar_lea.sflag [#allocation16], %s1901_s0  ;;  %s2219_s20 = sshll.u32 %s1957_s19, 4  ;;  %1052 = vst.msk [vmem:[%s1957_s19 + $0xc] sm:$0xf] %vm603_vm2, %v687_v53  ;;  %1050 = vst.msk [vmem:[%s1935_s16 + $0xc] sm:$0xf] %vm603_vm2, %v677_v54  ;;  %s2080_s20 = int_to_ptr.vmem [resolvable:$true] %s2219_s20 }
 0x3ab   : > { %1115 = dma.vmem_to_hbm [thread:$0]  (%p2216_p2), %s2032_s14, 512, %s2039_s30, %s2218_s11, %s1608_s15, %s1608_s15, %s1609_s27  }
 0x3ac   : > { %s2220_s5 = sld [smem:[#allocation30_spill]]  ;;  %s701_s1 = scalar_lea.sflag [#allocation4], %s1901_s0 }
 0x3ad   : > { %s1446_s2 = scalar_lea.vmem %s2042_s13, 256  ;;  %s1610_s14 = smov [#allocation11]  }
 0x3ae   : > { %p1447_p5 = scmp.ne.s32.totalorder %s2042_s13, %s1446_s2  ;;  %s1450_s30 = sshll.u32 %s1610_s14, 4  ;;  %s1451_s30 = int_to_ptr.vmem [resolvable:$false] %s1450_s30 }
 0x3af   : > { %s1452_s15 = scalar_lea.vmem %s1451_s30, 512  ;;  %p1453_p10 = scmp.lt.s32.totalorder %s2042_s13, %s1451_s30 }
 0x3b0   : > { %p1448_p6 = pnand %p1447_p5, %p2216_p2  ;;  %p1454_p7 = scmp.lt.s32.totalorder %s1452_s15, %s1446_s2 }
 0x3b2   : > { %s2086_s17 = scalar_lea.hbm %s2220_s5, %s1986_s25  ;;  %p1449_p12 = pneg %p1448_p6 }
 0x3b3   : > { %p1455_p11 = por %p1454_p7, %p1453_p10 }
 0x3b5   : > { %p1456_p9 = pnand %p1455_p11, %p1449_p12 }
 0x3b7   : > { %1459 = shalt.err (!%p1456_p9)
}
 0x3b8   : > { %s1460_s16 = scalar_lea.hbm %s2052_s24, 256  ;;  %s1464_s27 = scalar_lea.hbm %s2217_s12, 512 }
 0x3b9   : > { %p1461_p0 = scmp.ne.s32.totalorder %s2052_s24, %s1460_s16  ;;  %p1465_p1 = scmp.lt.u32.totalorder %s2052_s24, %s2217_s12 }
 0x3ba   : > { %p1466_p13 = scmp.lt.u32.totalorder %s1464_s27, %s1460_s16  ;;  %p1468_p5 = scmp.lt.u32.totalorder %s1460_s16, %s2052_s24 }
 0x3bb   : > { %p1462_p4 = pnand %p1461_p0, %p2216_p2 }
 0x3bc   : > { %p1467_p3 = por %p1466_p13, %p1465_p1 }
 0x3bd   : > { %p1463_p8 = pneg %p1462_p4 }
 0x3be   : > { %p1469_p6 = por %p1468_p5, %p1467_p3 }
 0x3c0   : > { %p1470_p12 = pnand %p1469_p6, %p1463_p8 }
 0x3c2   : > { %1473 = shalt.err (!%p1470_p12)
}
 0x3c3   : > { %s2221_s2 = smov 4   ;;  %s2222_s23 = smov 64  }
 0x3c4   : > { %1112 = dma.vmem_to_hbm [thread:$0]  (%p2216_p2), %s2042_s13, 256, %s2052_s24, %s701_s1, %s2222_s23, %s2222_s23, %s2221_s2  }
 0x3c5   : > { %s1474_s14 = scalar_lea.vmem %s2080_s20, 256  ;;  %s1611_s30 = smov [#allocation14]  }
 0x3c6   : > { %p1475_p10 = scmp.ne.s32.totalorder %s2080_s20, %s1474_s14  ;;  %s1478_s15 = sshll.u32 %s1611_s30, 4  ;;  %s1479_s15 = int_to_ptr.vmem [resolvable:$false] %s1478_s15 }
 0x3c7   : > { %s1480_s16 = scalar_lea.vmem %s1479_s15, 512  ;;  %p1481_p9 = scmp.lt.s32.totalorder %s2080_s20, %s1479_s15 }
 0x3c8   : > { %p1476_p7 = pnand %p1475_p10, %p2216_p2  ;;  %p1482_p0 = scmp.lt.s32.totalorder %s1480_s16, %s1474_s14 }
 0x3ca   : > { %p1477_p11 = pneg %p1476_p7  ;;  %p1483_p4 = por %p1482_p0, %p1481_p9 }
 0x3cc   : > { %p1484_p8 = pnand %p1483_p4, %p1477_p11 }
 0x3ce   : > { %1487 = shalt.err (!%p1484_p8)
}
 0x3cf   : > { %s1488_s1 = scalar_lea.hbm %s2086_s17, 256  ;;  %s1492_s24 = scalar_lea.hbm %s2220_s5, 512 }
 0x3d0   : > { %p1489_p1 = scmp.ne.s32.totalorder %s2086_s17, %s1488_s1  ;;  %p1493_p5 = scmp.lt.u32.totalorder %s2086_s17, %s2220_s5 }
 0x3d1   : > { %p1494_p6 = scmp.lt.u32.totalorder %s1492_s24, %s1488_s1  ;;  %p1496_p10 = scmp.lt.u32.totalorder %s1488_s1, %s2086_s17 }
 0x3d2   : > { %p1490_p13 = pnand %p1489_p1, %p2216_p2 }
 0x3d3   : > { %p1495_p12 = por %p1494_p6, %p1493_p5 }
 0x3d4   : > { %p1491_p3 = pneg %p1490_p13 }
 0x3d5   : > { %p1497_p7 = por %p1496_p10, %p1495_p12 }
 0x3d7   : > { %p1498_p11 = pnand %p1497_p7, %p1491_p3 }
 0x3d9   : > { %1501 = shalt.err (!%p1498_p11)
}
 0x3da   : > { %1114 = dma.vmem_to_hbm [thread:$0]  (%p2216_p2), %s2080_s20, 256, %s2086_s17, %s1996_s21, %s2222_s23, %s2222_s23, %s2221_s2  }
 0x3db PF: > { %s2223_s27 = sld [smem:[#allocation24_spill]]  ;;  %s2224_s11 = sld [smem:[#allocation25_spill]] }
 0x3dc   : > { %p2226_p0 = scmp.ge.s32.totalorder %s1576_s10, 2 }
 0x3e1   : > { %s796_s22 = sand.u32 1, %s2223_s27   ;;  %p2225_p9 = scmp.ne.s32.totalorder %s2224_s11, 0 }
 0x3e2   : > { %s797_s14 = scalar_lea.sflag [#allocation4], %s796_s22 }
 0x3e3   : > { %p1138_p4 = pnand %p2226_p0, %p2225_p9 }
 0x3e5   : > { %1543 = dma.done.wait (!%p1138_p4), %s797_s14, 256  }
 0x3e6   : > { %1545 = vsyncadd (!%p1138_p4), %s797_s14, 4294967040  ;;  %s2227_s7 = sadd.s32 4294967294, %s1576_s10  }
 0x3e7   : > { %s805_s30 = sand.u32 1, %s2227_s7  }
 0x3e8   : > { %s806_s15 = scalar_lea.sflag [#allocation13], %s805_s30 }
 0x3e9   : > { %1547 = dma.done.wait (!%p1138_p4), %s806_s15, 512  }
 0x3ea   : > { %1549 = vsyncadd (!%p1138_p4), %s806_s15, 4294966784  ;;  %s824_s16 = scalar_lea.sflag [#allocation16], %s796_s22 }
 0x3eb   : > { %1551 = dma.done.wait (!%p1138_p4), %s824_s16, 512  }
 0x3ec   : > { %1553 = vsyncadd (!%p1138_p4), %s824_s16, 4294966784  ;;  %s35_s10 = sadd.s32 1, %s1576_s10   ;;  %s2228_s27 = smov %s1560_s28 }
 0x3ed   : > { %p32_p2 = scmp.ge.s32.totalorder %s35_s10, 4   ;;  %s2229_s28 = smov %s1564_s29 }
 0x3ee   : > { %s2230_s29 = smov %s1828_s26  ;;  %s2231_s30 = smov %s1572_s9 }
 0x3ef   : > { %s2232_s9 = smov %s2234_s18  ;;  %34 = sbr.rel (!%p32_p2) target bundleno = 19 (0x13), region = 171 }
 0x3f6   :  { %829 = vsyncpa [#allocation3], 1 }
 0x3f7   :  { %831 = vsyncpa [#allocation3 + $0x1], 1 }
 0x3f8   :  { %832 = vsyncpa [#allocation6], 1 }
 0x3f9   :  { %834 = vsyncpa [#allocation6 + $0x1], 1 }
 0x3fa   :  { %835 = vsyncpa [#allocation9], 1 }
 0x3fb   :  { %836 = vsyncpa [#allocation4], 1 }
 0x3fc   :  { %838 = vsyncpa [#allocation4 + $0x1], 1 }
 0x3fd   :  { %839 = vsyncpa [#allocation13], 1 }
 0x3fe   :  { %841 = vsyncpa [#allocation13 + $0x1], 1 }
 0x3ff   :  { %842 = vsyncpa [#allocation16], 1 }
 0x400   :  { %844 = vsyncpa [#allocation16 + $0x1], 1 }

</bundles_post_ra>
